<compile_context>
chip_gen: v6e
topology: v6e:2x2x1
jax: 0.10.0
libtpu: 0.0.40
codegen_flags: <defaults>
</compile_context>

<pallas_src>
import functools

import jax
import jax.numpy as jnp
from jax.experimental import pallas as pl
from jax.experimental.pallas import tpu as pltpu

W0, W1 = 0.2, 0.8          # default weights from the module
SMOOTH = 1e-5
LANE = 128
PLANES = 2                 # plane 0: p*t (intersection), plane 1: p*p + t*t (union)


def _dice_kernel(logit_ref, truth_ref, out_ref, acc_ref, *,
                 tr, n_half, valid_rows, needs_mask, w0, w1):
    """Grid: (c, b, r). c = row-range split (megacore), b = sample, r = reduction."""
    c = pl.program_id(0)
    r = pl.program_id(2)

    @pl.when(r == 0)
    def _():
        acc_ref[...] = jnp.zeros_like(acc_ref)

    p_in = logit_ref[0].astype(jnp.float32)   # (tr, 128)
    t_in = truth_ref[0].astype(jnp.float32)   # (tr, 128)

    if needs_mask:
        # Mask the INPUTS (not the products): rows past the valid range come from a
        # partially / fully out-of-bounds block and may contain arbitrary garbage.
        tile = c * n_half + r                                   # logical tile index
        row = tile * tr + jax.lax.broadcasted_iota(jnp.int32, (tr, LANE), 0)
        keep = row < valid_rows
        p_in = jnp.where(keep, p_in, 0.0)
        t_in = jnp.where(keep, t_in, 0.0)

    w = t_in * (w1 - w0) + w0
    p = w * p_in
    t = w * t_in

    # Per-tile tree reduction (tr, 128) -> (8, 128): each (8, 128) slice is one f32
    # vreg, so this is pure VALU adds.  Accumulate into the tiny persistent scratch
    # instead of a full-tile accumulator RMW.
    inter = jnp.sum((p * t).reshape(tr // 8, 8, LANE), axis=0)
    union = jnp.sum((p * p + t * t).reshape(tr // 8, 8, LANE), axis=0)
    acc_ref[0] += inter
    acc_ref[1] += union

    @pl.when(r == pl.num_programs(2) - 1)
    def _():
        # One sublane reduction per (split, sample); lane reduction + dice in wrapper.
        out_ref[0, 0] = jnp.sum(acc_ref[...], axis=1)           # (PLANES, 128)


def weighted_dice_loss(logit, truth, *, weights=(W0, W1), smooth=SMOOTH,
                       tile_rows=2048):
    """logit, truth: (B, C, H, W) arrays (f32 or bf16). Returns scalar f32 loss."""
    B = logit.shape[0]
    logit2d = logit.reshape(B, -1)
    truth2d = truth.reshape(B, -1)
    assert logit2d.shape == truth2d.shape
    N = logit2d.shape[1]

    # Minimal padding: only up to a multiple of 8*128 so the free reshape to
    # (B, rows, 128) is legal.  Coverage beyond that (ragged last tile, odd tile
    # count for the 2-way split) is handled by in-kernel masking — we never pad to
    # a multiple of the tile size.
    n_rows = -(-N // (8 * LANE)) * 8
    n_pad = n_rows * LANE - N
    if n_pad:
        # TODO(synk): this still materializes one copy of the inputs when C*H*W is
        # not a multiple of 1024; unavoidable without a strided (B, N) BlockSpec.
        logit2d = jnp.pad(logit2d, ((0, 0), (0, n_pad)))
        truth2d = jnp.pad(truth2d, ((0, 0), (0, n_pad)))

    logit3d = logit2d.reshape(B, n_rows, LANE)
    truth3d = truth2d.reshape(B, n_rows, LANE)

    tr = max(8, (tile_rows // 8) * 8)
    tr = min(tr, n_rows)                       # clamp tile for small inputs
    n_tiles = -(-n_rows // tr)
    split = 2 if n_tiles >= 2 else 1           # engage both TCs on v7x even at B=1
    n_half = -(-n_tiles // split)
    needs_mask = (split * n_half * tr) != n_rows

    kernel = functools.partial(
        _dice_kernel, tr=tr, n_half=n_half, valid_rows=n_rows,
        needs_mask=needs_mask, w0=float(weights[0]), w1=float(weights[1]))

    def in_map(c, b, r):
        # Clamp so a fully-out-of-range logical tile (odd tile count, second split)
        # re-reads the last real tile; its contents are discarded by the mask.
        return (b, jnp.minimum(c * n_half + r, n_tiles - 1), 0)

    partials = pl.pallas_call(
        kernel,
        out_shape=jax.ShapeDtypeStruct((split, B, PLANES, LANE), jnp.float32),
        grid_spec=pltpu.PrefetchScalarGridSpec(
            num_scalar_prefetch=0,
            grid=(split, B, n_half),
            in_specs=[
                pl.BlockSpec((1, tr, LANE), in_map),
                pl.BlockSpec((1, tr, LANE), in_map),
            ],
            out_specs=pl.BlockSpec((1, 1, PLANES, LANE),
                                   lambda c, b, r: (c, b, 0, 0)),
            scratch_shapes=[pltpu.VMEM((PLANES, 8, LANE), jnp.float32)],
        ),
        compiler_params=pltpu.CompilerParams(
            dimension_semantics=("parallel", "parallel", "arbitrary"),
        ),
    )(logit3d, truth3d)

    sums = jnp.sum(partials, axis=(0, 3))          # (B, PLANES)
    intersection = sums[:, 0]
    union = sums[:, 1]
    dice = 1.0 - (2.0 * intersection + smooth) / (union + smooth)
    return jnp.mean(dice)


def weighted_dice_loss_ref(logit, truth, *, weights=(W0, W1), smooth=SMOOTH):
    """Pure-JAX reference mirroring the PyTorch forward."""
    B = logit.shape[0]
    p = logit.reshape(B, -1).astype(jnp.float32)
    t = truth.reshape(B, -1).astype(jnp.float32)
    w = t * (weights[1] - weights[0]) + weights[0]
    p = w * p
    t = w * t
    intersection = jnp.sum(p * t, axis=-1)
    union = jnp.sum(p * p, axis=-1) + jnp.sum(t * t, axis=-1)
    dice = 1.0 - (2.0 * intersection + smooth) / (union + smooth)
    return jnp.mean(dice)


if __name__ == "__main__":
    key = jax.random.PRNGKey(0)
    k1, k2 = jax.random.split(key)

    # Case 1: module-typical small shape (B, C, H, W) = (2, 4, 16, 16).
    logit = jax.nn.sigmoid(jax.random.normal(k1, (2, 4, 16, 16), dtype=jnp.float32))
    truth = (jax.random.uniform(k2, (2, 4, 16, 16)) > 0.5).astype(jnp.float32)
    out = jax.block_until_ready(weighted_dice_loss(logit, truth))
    ref = jax.block_until_ready(weighted_dice_loss_ref(logit, truth))
    assert jnp.allclose(out, ref, rtol=1e-4, atol=1e-6), (out, ref)

    # Case 2: feature size not a multiple of 128 (minimal zero-pad path).
    logit2 = jax.nn.sigmoid(jax.random.normal(k1, (2, 3, 15, 17), dtype=jnp.float32))
    truth2 = (jax.random.uniform(k2, (2, 3, 15, 17)) > 0.5).astype(jnp.float32)
    out2 = jax.block_until_ready(weighted_dice_loss(logit2, truth2))
    ref2 = jax.block_until_ready(weighted_dice_loss_ref(logit2, truth2))
    assert jnp.allclose(out2, ref2, rtol=1e-4, atol=1e-6), (out2, ref2)

    # Case 3: exercises the 2-way row split, odd tile count (index clamp) and the
    # ragged-tile input masking (small tile_rows forces several reduction steps).
    logit3 = jax.nn.sigmoid(jax.random.normal(k1, (2, 4, 96, 96), dtype=jnp.float32))
    truth3 = (jax.random.uniform(k2, (2, 4, 96, 96)) > 0.5).astype(jnp.float32)
    out3 = jax.block_until_ready(weighted_dice_loss(logit3, truth3, tile_rows=64))
    ref3 = jax.block_until_ready(weighted_dice_loss_ref(logit3, truth3))
    assert jnp.allclose(out3, ref3, rtol=1e-4, atol=1e-6), (out3, ref3)

    print("KERNEL_OK")
</pallas_src>

<mosaic_0001>
module attributes {stable_mosaic.version = 11 : i64} {
  func.func @_dice_kernel(%arg0: i32, %arg1: i32, %arg2: i32, %arg3: memref<1x8x128xf32, #tpu.memory_space<vmem>>, %arg4: memref<1x8x128xf32, #tpu.memory_space<vmem>>, %arg5: memref<1x1x2x128xf32, #tpu.memory_space<vmem>>, %arg6: memref<2x8x128xf32, #tpu.memory_space<vmem>>) attributes {dimension_semantics = [#tpu.dimension_semantics<parallel>, #tpu.dimension_semantics<parallel>, #tpu.dimension_semantics<arbitrary>], iteration_bounds = array<i64: 1, 2, 1>, scalar_prefetch = 0 : i64, scratch_operands = 1 : i64, tpu.core_type = #tpu.core_type<tc>, window_params = [{transform_indices = @transform_0, window_bounds = array<i64: 1, 8, 128>}, {transform_indices = @transform_1, window_bounds = array<i64: 1, 8, 128>}, {transform_indices = @transform_2, window_bounds = array<i64: 1, 1, 2, 128>}]} {
    %c0_i32 = arith.constant 0 : i32
    %0 = arith.cmpi eq, %arg2, %c0_i32 : i32
    %1 = arith.extui %0 : i1 to i32
    %c0_i32_0 = arith.constant 0 : i32
    %2 = arith.cmpi ne, %1, %c0_i32_0 : i32
    scf.if %2 {
      %cst_22 = arith.constant 0.000000e+00 : f32
      %36 = vector.broadcast %cst_22 : f32 to vector<2x8x128xf32>
      %c0_23 = arith.constant 0 : index
      %c0_24 = arith.constant 0 : index
      %c0_25 = arith.constant 0 : index
      %37 = vector.load %arg6[%c0_23, %c0_24, %c0_25] : memref<2x8x128xf32, #tpu.memory_space<vmem>>, vector<2x8x128xf32>
      tpu.vector_store %arg6[%c0_23, %c0_24, %c0_25], %36 {strides = array<i32>} : memref<2x8x128xf32, #tpu.memory_space<vmem>>, vector<2x8x128xf32>,
    } else {
    }
    %c0 = arith.constant 0 : index
    %c0_1 = arith.constant 0 : index
    %c0_2 = arith.constant 0 : index
    %3 = vector.load %arg3[%c0, %c0_1, %c0_2] : memref<1x8x128xf32, #tpu.memory_space<vmem>>, vector<1x8x128xf32>
    %4 = vector.shape_cast %3 : vector<1x8x128xf32> to vector<8x128xf32>
    %c0_3 = arith.constant 0 : index
    %c0_4 = arith.constant 0 : index
    %c0_5 = arith.constant 0 : index
    %5 = vector.load %arg4[%c0_3, %c0_4, %c0_5] : memref<1x8x128xf32, #tpu.memory_space<vmem>>, vector<1x8x128xf32>
    %6 = vector.shape_cast %5 : vector<1x8x128xf32> to vector<8x128xf32>
    %cst = arith.constant 6.000000e-01 : f32
    %7 = vector.broadcast %cst : f32 to vector<8x128xf32>
    %8 = arith.mulf %6, %7 : vector<8x128xf32>
    %cst_6 = arith.constant 2.000000e-01 : f32
    %9 = vector.broadcast %cst_6 : f32 to vector<8x128xf32>
    %10 = arith.addf %8, %9 : vector<8x128xf32>
    %11 = arith.mulf %10, %4 : vector<8x128xf32>
    %12 = arith.mulf %10, %6 : vector<8x128xf32>
    %13 = arith.mulf %11, %12 : vector<8x128xf32>
    %14 = vector.shape_cast %13 : vector<8x128xf32> to vector<1x8x128xf32>
    %cst_7 = arith.constant dense<0.000000e+00> : vector<8x128xf32>
    %15 = vector.multi_reduction <add>, %14, %cst_7 [0] : vector<1x8x128xf32> to vector<8x128xf32>
    %16 = arith.mulf %11, %11 : vector<8x128xf32>
    %17 = arith.mulf %12, %12 : vector<8x128xf32>
    %18 = arith.addf %16, %17 : vector<8x128xf32>
    %19 = vector.shape_cast %18 : vector<8x128xf32> to vector<1x8x128xf32>
    %cst_8 = arith.constant dense<0.000000e+00> : vector<8x128xf32>
    %20 = vector.multi_reduction <add>, %19, %cst_8 [0] : vector<1x8x128xf32> to vector<8x128xf32>
    %c0_9 = arith.constant 0 : index
    %c0_10 = arith.constant 0 : index
    %c0_11 = arith.constant 0 : index
    %21 = vector.load %arg6[%c0_9, %c0_10, %c0_11] : memref<2x8x128xf32, #tpu.memory_space<vmem>>, vector<1x8x128xf32>
    %22 = vector.shape_cast %21 : vector<1x8x128xf32> to vector<8x128xf32>
    %23 = arith.addf %22, %15 : vector<8x128xf32>
    %c0_12 = arith.constant 0 : index
    %c0_13 = arith.constant 0 : index
    %c0_14 = arith.constant 0 : index
    %24 = vector.load %arg6[%c0_12, %c0_13, %c0_14] : memref<2x8x128xf32, #tpu.memory_space<vmem>>, vector<1x8x128xf32>
    %25 = vector.shape_cast %24 : vector<1x8x128xf32> to vector<8x128xf32>
    %26 = vector.shape_cast %23 : vector<8x128xf32> to vector<1x8x128xf32>
    tpu.vector_store %arg6[%c0_12, %c0_13, %c0_14], %26 {strides = array<i32>} : memref<2x8x128xf32, #tpu.memory_space<vmem>>, vector<1x8x128xf32>,
    %c1 = arith.constant 1 : index
    %c0_15 = arith.constant 0 : index
    %c0_16 = arith.constant 0 : index
    %27 = vector.load %arg6[%c1, %c0_15, %c0_16] : memref<2x8x128xf32, #tpu.memory_space<vmem>>, vector<1x8x128xf32>
    %28 = vector.shape_cast %27 : vector<1x8x128xf32> to vector<8x128xf32>
    %29 = arith.addf %28, %20 : vector<8x128xf32>
    %c1_17 = arith.constant 1 : index
    %c0_18 = arith.constant 0 : index
    %c0_19 = arith.constant 0 : index
    %30 = vector.load %arg6[%c1_17, %c0_18, %c0_19] : memref<2x8x128xf32, #tpu.memory_space<vmem>>, vector<1x8x128xf32>
    %31 = vector.shape_cast %30 : vector<1x8x128xf32> to vector<8x128xf32>
    %32 = vector.shape_cast %29 : vector<8x128xf32> to vector<1x8x128xf32>
    tpu.vector_store %arg6[%c1_17, %c0_18, %c0_19], %32 {strides = array<i32>} : memref<2x8x128xf32, #tpu.memory_space<vmem>>, vector<1x8x128xf32>,
    %c0_i32_20 = arith.constant 0 : i32
    %33 = arith.cmpi eq, %arg2, %c0_i32_20 : i32
    %34 = arith.extui %33 : i1 to i32
    %c0_i32_21 = arith.constant 0 : i32
    %35 = arith.cmpi ne, %34, %c0_i32_21 : i32
    scf.if %35 {
      %c0_22 = arith.constant 0 : index
      %c0_23 = arith.constant 0 : index
      %c0_24 = arith.constant 0 : index
      %36 = vector.load %arg6[%c0_22, %c0_23, %c0_24] : memref<2x8x128xf32, #tpu.memory_space<vmem>>, vector<2x8x128xf32>
      %cst_25 = arith.constant dense<0.000000e+00> : vector<2x128xf32>
      %37 = vector.multi_reduction <add>, %36, %cst_25 [1] : vector<2x8x128xf32> to vector<2x128xf32>
      %c0_26 = arith.constant 0 : index
      %c0_27 = arith.constant 0 : index
      %c0_28 = arith.constant 0 : index
      %c0_29 = arith.constant 0 : index
      %38 = vector.load %arg5[%c0_26, %c0_27, %c0_28, %c0_29] : memref<1x1x2x128xf32, #tpu.memory_space<vmem>>, vector<1x1x2x128xf32>
      %39 = vector.shape_cast %38 : vector<1x1x2x128xf32> to vector<2x128xf32>
      %40 = vector.shape_cast %37 : vector<2x128xf32> to vector<1x1x2x128xf32>
      tpu.vector_store %arg5[%c0_26, %c0_27, %c0_28, %c0_29], %40 {strides = array<i32>} : memref<1x1x2x128xf32, #tpu.memory_space<vmem>>, vector<1x1x2x128xf32>,
    } else {
    }
    return
  }
  func.func @transform_0(%arg0: i32, %arg1: i32, %arg2: i32) -> (i32, i32, i32) {
    %c1_i32 = arith.constant 1 : i32
    %0 = arith.muli %arg0, %c1_i32 : i32
    %1 = arith.addi %0, %arg2 : i32
    %c0_i32 = arith.constant 0 : i32
    %2 = arith.minsi %1, %c0_i32 : i32
    %c0_i32_0 = arith.constant 0 : i32
    %c0_i32_1 = arith.constant 0 : i32
    return %arg1, %2, %c0_i32_0 : i32, i32, i32
  }
  func.func @transform_1(%arg0: i32, %arg1: i32, %arg2: i32) -> (i32, i32, i32) {
    %c1_i32 = arith.constant 1 : i32
    %0 = arith.muli %arg0, %c1_i32 : i32
    %1 = arith.addi %0, %arg2 : i32
    %c0_i32 = arith.constant 0 : i32
    %2 = arith.minsi %1, %c0_i32 : i32
    %c0_i32_0 = arith.constant 0 : i32
    %c0_i32_1 = arith.constant 0 : i32
    return %arg1, %2, %c0_i32_0 : i32, i32, i32
  }
  func.func @transform_2(%arg0: i32, %arg1: i32, %arg2: i32) -> (i32, i32, i32, i32) {
    %c0_i32 = arith.constant 0 : i32
    %c0_i32_0 = arith.constant 0 : i32
    %c0_i32_1 = arith.constant 0 : i32
    return %arg0, %arg1, %c0_i32, %c0_i32_0 : i32, i32, i32, i32
  }
}

</mosaic_0001>

<bundles_post_ra>
// kernel: tpu_custom_call.1
= control target key start
LH: loop header
LB: loop body
LE: loop exit
PB: predicated region body
PF: predicated region fallthrough
CT: control target
= control target key end

     0   :  { %7 = vsyncpa [#allocation4], 0  ;;  %s830_s0 = inlined_call_operand.hbm [shape: f32[2,8,128], index: 0, kind: input, shape index: {}]   ;;  %s831_s1 = inlined_call_operand.hbm [shape: f32[2,8,128], index: 1, kind: input, shape index: {}]   ;;  %s832_s2 = inlined_call_operand.hbm [shape: f32[1,2,2,128], index: 2, kind: output, shape index: {}]  }
   0x1   :  { %9 = vsyncpa [#allocation4 + $0x1], 0 }
   0x2   :  { %10 = vsyncpa [#allocation7], 0 }
   0x3   :  { %12 = vsyncpa [#allocation7 + $0x1], 0 }
   0x4   :  { %13 = vsyncpa [#allocation5], 0 }
   0x5   :  { %15 = vsyncpa [#allocation5 + $0x1], 0  ;;  %s662_s9 = smov 0   ;;  %s664_s10 = smov 0  }
   0x6   :  { %s666_s11 = smov 0   ;;  %s668_s12 = smov 0  }
   0x7   :  { %s670_s13 = smov 0   ;;  %s672_s14 = smov 0  }
   0x8 LB: > { %s419_s15 = sadd.s32 4294967295, %s642_s14   ;;  %s420_s16 = sadd.s32 4294967294, %s642_s14   ;;  %s642_s14 = sphi %s672_s14, %s21_s14   ;;  %s638_s13 = sphi %s670_s13, %s844_s13   ;;  %s634_s12 = sphi %s668_s12, %s843_s12   ;;  %s630_s11 = sphi %s666_s11, %s842_s11   ;;  %s626_s10 = sphi %s664_s10, %s841_s10   ;;  %s622_s9 = sphi %s662_s9, %s840_s9  }
   0x9   : > { %s36_s17 = sadd.s32 1, %s638_s13  ;;  %s55_s18 = sadd.s32 1, %s630_s11 }
   0xa   : > { %p38_p0 = scmp.ge.s32.totalorder %s36_s17, 2  ;;  %p62_p1 = scmp.ne.s32.totalorder %s630_s11, %s626_s10 }
   0xb   : > { %p63_p2 = scmp.eq.s32.totalorder %s642_s14, 0  ;;  %p68_p3 = scmp.ne.s32.totalorder %s626_s10, %s622_s9 }
   0xc   : > { %s846_s17 = smov (%p38_p0, %s36_s17), 0  ;;  %p69_p5 = scmp.eq.s32.totalorder %s419_s15, 0 }
   0xd   : > { %p703_p4 = por %p63_p2, %p62_p1  ;;  %s50_s20 = ssub.s32 %s638_s13, %s846_s17 }
   0xe   : > { %p128_p6 = scmp.eq.s32.totalorder %s419_s15, 1  ;;  %p53_p7 = scmp.eq.s32.totalorder %s50_s20, 0 }
   0xf   : > { %p709_p8 = por %p69_p5, %p68_p3  ;;  %p134_p10 = scmp.eq.s32.totalorder %s420_s16, 1 }
  0x10   : > { %p713_p9 = por %p128_p6, %p62_p1  ;;  %p452_p13 = scmp.lt.s32.totalorder %s642_s14, 2 }
  0x11   : > { %s718_s23 = scalar_select %p53_p7, %s630_s11, %s55_s18  }
  0x12   : > { %p720_p11 = por %p134_p10, %p68_p3  ;;  %s727_s25 = sand.u32 1, %s630_s11  }
  0x13   : > { %s423_s26 = sshll.u32 %s727_s25, 3  ;;  %s424_s27 = sshll.u32 %s638_s13, 7 }
  0x14   : > { %s167_s30 = scalar_lea.hbm %s830_s0, %s424_s27  ;;  %s158_s3 = scalar_lea.vmem [#allocation3], %s423_s26 }
  0x15   : > { %s169_s4 = sshll.u32 %s158_s3, 4  ;;  %p736_p0 = pnand %p452_p13, %p703_p4  ;;  %s170_s4 = int_to_ptr.vmem [resolvable:$true] %s169_s4 }
  0x16   : > { %p427_p1 = scmp.ge.s32.totalorder %s642_s14, 1  ;;  %p196_p2 = scmp.lt.s32.totalorder %s642_s14, 3 }
  0x17   : > { %s155_s6 = scalar_lea.sflag [#allocation4], %s727_s25  ;;  %p504_p3 = pneg %p736_p0 }
  0x18   : > { %s515_s7 = scalar_lea.vmem %s170_s4, 128  ;;  %s644_s8 = smov [#allocation3]  }
  0x19   : > { %p516_p5 = scmp.ne.s32.totalorder %s170_s4, %s515_s7  ;;  %s520_s15 = sshll.u32 %s644_s8, 4  ;;  %s521_s15 = int_to_ptr.vmem [resolvable:$false] %s520_s15 }
  0x1a   : > { %s522_s16 = scalar_lea.vmem %s521_s15, 256  ;;  %p523_p4 = scmp.lt.s32.totalorder %s170_s4, %s521_s15 }
  0x1b   : > { %p518_p6 = pnand %p516_p5, %p504_p3  ;;  %p524_p10 = scmp.lt.s32.totalorder %s522_s16, %s515_s7 }
  0x1d   : > { %p519_p7 = pneg %p518_p6  ;;  %p525_p13 = por %p524_p10, %p523_p4 }
  0x1f   : > { %p526_p12 = pnand %p525_p13, %p519_p7 }
  0x21   : > { %529 = shalt.err (!%p526_p12)
}
  0x22   : > { %444 = dma.hbm_to_vmem [thread:$0]  (!%p736_p0), %s167_s30, 128, %s170_s4, %s155_s6  }
  0x23   : > { %p754_p5 = pnand %p427_p1, %p196_p2  ;;  %s189_s28 = scalar_lea.hbm %s831_s1, %s424_s27 }
  0x24   : > { %s180_s29 = scalar_lea.vmem [#allocation6], %s423_s26  ;;  %s177_s7 = scalar_lea.sflag [#allocation7], %s727_s25 }
  0x25   : > { %s191_s3 = sshll.u32 %s180_s29, 4  ;;  %s645_s30 = smov [#allocation6]   ;;  %s192_s3 = int_to_ptr.vmem [resolvable:$true] %s191_s3 }
  0x26   : > { %s543_s8 = scalar_lea.vmem %s192_s3, 128  ;;  %s548_s4 = sshll.u32 %s645_s30, 4  ;;  %s549_s4 = int_to_ptr.vmem [resolvable:$false] %s548_s4 }
  0x27   : > { %p544_p12 = scmp.ne.s32.totalorder %s192_s3, %s543_s8  ;;  %s550_s6 = scalar_lea.vmem %s549_s4, 256 }
  0x28   : > { %p551_p1 = scmp.lt.s32.totalorder %s192_s3, %s549_s4  ;;  %p552_p2 = scmp.lt.s32.totalorder %s550_s6, %s543_s8 }
  0x29   : > { %p546_p6 = pnand %p544_p12, %p504_p3 }
  0x2a   : > { %p553_p4 = por %p552_p2, %p551_p1 }
  0x2b   : > { %p547_p7 = pneg %p546_p6 }
  0x2d   : > { %p554_p10 = pnand %p553_p4, %p547_p7 }
  0x2f   : > { %557 = shalt.err (!%p554_p10)
}
  0x30   : > { %447 = dma.hbm_to_vmem [thread:$0]  (!%p736_p0), %s189_s28, 128, %s192_s3, %s177_s7  }
  0x31   : > { %200 = sbr.rel (%p754_p5) target bundleno = 94 (0x5e), region = 28  ;;  %s770_s25 = sand.u32 (!%p754_p5), 1, %s626_s10  }
  0x32   : > { %s428_s26 = sshll.u32 (!%p754_p5), %s770_s25, 3  ;;  %s203_s27 = scalar_lea.sflag (!%p754_p5), [#allocation4], %s770_s25 }
  0x33   : > { %s206_s15 = scalar_lea.vmem (!%p754_p5), [#allocation3], %s428_s26 }
  0x36   : > { %609 = dma.done.wait (%p709_p8), %s203_s27, 128  }
  0x37   : > { %611 = vsyncadd (%p709_p8), %s203_s27, 4294967168  ;;  %s212_s5 = scalar_lea.sflag [#allocation7], %s770_s25  ;;  %s215_s16 = scalar_lea.vmem [#allocation6], %s428_s26 }
  0x38   : > { %613 = dma.done.wait (%p709_p8), %s212_s5, 128  }
  0x39   : > { %615 = vsyncadd (%p709_p8), %s212_s5, 4294967168  ;;  %v254_v0 = vld [vmem:[%s215_s16] sm:$0xff]  ;;  %v253_v2 = vld [vmem:[%s206_s15] sm:$0xff]  ;;  %s430_s18 = sshll.u32 %s770_s25, 1  ;;  %s432_s20 = sshll.u32 %s634_s12, 5  ;;  %vm291_vm0 = vcmask 1041409  }
  0x3a   : > { %v255_v1 = vmul.f32 0.6, %v254_v0  ;;  %s240_s21 = scalar_lea.vmem [#allocation8], %s430_s18  ;;  %s309_s3 = scalar_lea.hbm %s832_s2, %s432_s20 }
  0x3b   : > { %s311_s19 = sshll.u32 %s240_s21, 4  ;;  %s296_s7 = scalar_lea.sflag [#allocation5], %s770_s25  ;;  %s785_s19 = int_to_ptr.vmem [resolvable:$true] %s311_s19 }
  0x3c   : > { %v256_v3 = vadd.f32 0.2, %v255_v1  ;;  %s558_s8 = scalar_lea.vmem %s785_s19, 32  ;;  %s646_s12 = smov [#allocation8]  }
  0x3d   : > { %p559_p8 = scmp.ne.s32.totalorder %s785_s19, %s558_s8  ;;  %s562_s30 = sshll.u32 %s646_s12, 4  ;;  %s563_s30 = int_to_ptr.vmem [resolvable:$false] %s562_s30 }
  0x3e   : > { %v257_v4 = vmul.f32 %v256_v3, %v253_v2  ;;  %v258_v5 = vmul.f32 %v256_v3, %v254_v0  ;;  %s564_s4 = scalar_lea.vmem %s563_s30, 64  ;;  %p565_p13 = scmp.lt.s32.totalorder %s785_s19, %s563_s30 }
  0x3f   : > { %p560_p0 = pnand %p559_p8, %p713_p9  ;;  %p566_p5 = scmp.lt.s32.totalorder %s564_s4, %s558_s8 }
  0x40   : > { %v259_v6 = vmul.f32 %v258_v5, %v257_v4  ;;  %v261_v7 = vmul.f32 %v257_v4, %v257_v4  ;;  %v262_v8 = vmul.f32 %v258_v5, %v258_v5 }
  0x41   : > { %p561_p3 = pneg %p560_p0  ;;  %p567_p12 = por %p566_p5, %p565_p13 }
  0x42   : > { %v263_v9 = vadd.f32 %v262_v8, %v261_v7  ;;  %v277_v10 = vrot.slane %v259_v6, 4 }
  0x43   : > { %p568_p6 = pnand %p567_p12, %p561_p3 }
  0x44   : > { %v278_v11 = vadd.f32 %v277_v10, %v259_v6  ;;  %v283_v12 = vrot.slane %v263_v9, 4 }
  0x46   : > { %v279_v13 = vrot.slane %v278_v11, 2  ;;  %v284_v14 = vadd.f32 %v283_v12, %v263_v9 }
  0x48   : > { %v280_v15 = vadd.f32 %v279_v13, %v278_v11  ;;  %v285_v16 = vrot.slane %v284_v14, 2 }
  0x4a   : > { %v281_v17 = vrot.slane %v280_v15, 1  ;;  %v286_v18 = vadd.f32 %v285_v16, %v284_v14 }
  0x4c   : > { %v282_v19 = vadd.f32 %v281_v17, %v280_v15  ;;  %v287_v20 = vrot.slane %v286_v18, 1 }
  0x4e   : > { %v288_v21 = vadd.f32 %v287_v20, %v286_v18 }
  0x50   : > { %v292_v22 = vsel %vm291_vm0, %v288_v21, %v282_v19 }
  0x51   : > { %294 = vst [vmem:[%s240_s21] sm:$0x3] %v292_v22 }
  0x52   : > { %571 = shalt.err (!%p568_p6)
}
  0x53   : > { %s572_s6 = scalar_lea.hbm %s309_s3, 32  ;;  %s576_s27 = scalar_lea.hbm %s832_s2, 64 }
  0x54   : > { %p573_p7 = scmp.ne.s32.totalorder %s309_s3, %s572_s6  ;;  %p577_p4 = scmp.lt.s32.totalorder %s309_s3, %s832_s2 }
  0x55   : > { %p578_p10 = scmp.lt.s32.totalorder %s576_s27, %s572_s6 }
  0x56   : > { %p574_p1 = pnand %p573_p7, %p713_p9 }
  0x57   : > { %p579_p8 = por %p578_p10, %p577_p4 }
  0x58   : > { %p575_p2 = pneg %p574_p1 }
  0x5a   : > { %p580_p0 = pnand %p579_p8, %p575_p2 }
  0x5c   : > { %583 = shalt.err (!%p580_p0)
}
  0x5d   : > { %439 = dma.vmem_to_hbm [thread:$0]  (%p713_p9), %s785_s19, 32, %s309_s3, %s296_s7  }
  0x5e PF: > { %s323_s16 = sand.u32 1, %s622_s9   ;;  %p839_p3 = scmp.ge.s32.totalorder %s642_s14, 2 }
  0x5f   : > { %s324_s18 = scalar_lea.sflag [#allocation5], %s323_s16 }
  0x60   : > { %p449_p13 = pnand %p839_p3, %p720_p11 }
  0x62   : > { %p450_p5 = pneg %p449_p13 }
  0x64   : > { %617 = dma.done.wait (%p450_p5), %s324_s18, 32  }
  0x65   : > { %619 = vsyncadd (%p450_p5), %s324_s18, 4294967264  ;;  %s21_s14 = sadd.s32 1, %s642_s14   ;;  %s840_s9 = smov %s626_s10 }
  0x66   : > { %p18_p12 = scmp.ge.s32.totalorder %s21_s14, 4   ;;  %s841_s10 = smov %s630_s11 }
  0x67   : > { %s842_s11 = smov %s718_s23  ;;  %s843_s12 = smov %s638_s13 }
  0x68   : > { %s844_s13 = smov %s846_s17  ;;  %20 = sbr.rel (!%p18_p12) target bundleno = 8 (0x8), region = 95 }
  0x6d   :  { %329 = vsyncpa [#allocation4], 1 }
  0x6e   :  { %331 = vsyncpa [#allocation4 + $0x1], 1 }
  0x6f   :  { %332 = vsyncpa [#allocation7], 1 }
  0x70   :  { %334 = vsyncpa [#allocation7 + $0x1], 1 }
  0x71   :  { %335 = vsyncpa [#allocation5], 1 }
  0x72   :  { %337 = vsyncpa [#allocation5 + $0x1], 1 }

</bundles_post_ra>
